<compile_context>
chip_gen: v5e
topology: v5e:2x2
jax: 0.10.0
libtpu: 0.0.40
codegen_flags: <defaults>
</compile_context>

<pallas_src>
import functools

import jax
import jax.numpy as jnp
from jax.experimental import pallas as pl
from jax.experimental.pallas import tpu as pltpu


def attinatt_kernel(att_ref, w_ref, out_ref, *, s_chunk):
    """One grid step: TM flattened (B*N) rows.

    att_ref : (TM, S, D) VMEM  input block (f32 or bf16)
    w_ref   : (1, D)     VMEM  beta_net.weight as a lane-dense f32 row
    out_ref : (TM, D)    VMEM  attended features for this block
    """
    S = att_ref.shape[1]
    w_row = w_ref[...].astype(jnp.float32)                      # (1, D)

    def chunk_logits(a):                                        # a: (TM, SC, D)
        # beta_net(tanh(a)) -> (TM, SC); lane-reduce over D rides the XLU.
        # (bias omitted: softmax is shift-invariant.)
        return jnp.sum(jnp.tanh(a) * w_row[None, :, :], axis=-1)

    # ---- online softmax: single pass over S, chunked by s_chunk sublanes ---
    # First chunk peeled so no -inf initialization is needed.
    c1 = min(s_chunk, S)
    a = att_ref[:, 0:c1, :].astype(jnp.float32)                 # (TM, SC, D)
    s = chunk_logits(a)                                         # (TM, SC)
    m = jnp.max(s, axis=-1, keepdims=True)                      # (TM, 1)
    p = jnp.exp(s - m)                                          # (TM, SC)
    l = jnp.sum(p, axis=-1, keepdims=True)                      # (TM, 1)
    acc = jnp.sum(p[..., None] * a, axis=1)                     # (TM, D)

    # Remaining chunks (static Python loop: chunk count is static & small).
    for c0 in range(s_chunk, S, s_chunk):
        c1 = min(c0 + s_chunk, S)
        a = att_ref[:, c0:c1, :].astype(jnp.float32)            # (TM, SC, D)
        s = chunk_logits(a)                                     # (TM, SC)
        m_new = jnp.maximum(m, jnp.max(s, axis=-1, keepdims=True))
        alpha = jnp.exp(m - m_new)                              # (TM, 1)
        p = jnp.exp(s - m_new)                                  # (TM, SC)
        l = alpha * l + jnp.sum(p, axis=-1, keepdims=True)
        acc = alpha * acc + jnp.sum(p[..., None] * a, axis=1)
        m = m_new

    # Exact normalization (approx reciprocal breaks 1e-5 parity).
    out_ref[...] = (acc / l).astype(out_ref.dtype)


def _pick_tm(M, bytes_per_row, target_block_bytes, min_grid_steps=8):
    """Largest divisor of M whose (tm, S, D) block fits the byte budget,
    preferring >= min_grid_steps grid steps when M is large enough
    (keeps both v7x TensorCores fed). tm may go all the way down to 1."""
    max_rows = max(1, target_block_bytes // max(bytes_per_row, 1))
    divs = set()
    d = 1
    while d * d <= M:
        if M % d == 0:
            divs.add(d)
            divs.add(M // d)
        d += 1
    fitting = [x for x in divs if x <= max_rows]
    if not fitting:
        return 1
    if M >= min_grid_steps * 8:
        preferred = [x for x in fitting if M // x >= min_grid_steps]
        if preferred:
            return max(preferred)
    return max(fitting)


def attinatt_forward(att_feats, w, b=None, *, target_block_bytes=4 << 20):
    """Pallas implementation of AttinAtt.forward.

    att_feats : (B, N, ..., D)  float32 or bfloat16
    w         : (1, D)          beta_net.weight (PyTorch Linear layout)
    b         : (1,)            beta_net.bias -- ignored (softmax shift-invariance)
    returns   : (B, N, D) in att_feats.dtype
    """
    del b  # softmax(logits + c) == softmax(logits): the bias add is dead work.
    B, N = att_feats.shape[0], att_feats.shape[1]
    D = att_feats.shape[-1]
    S = att_feats.size // (B * N * D)          # same as the PyTorch att_size
    M = B * N
    att_flat = att_feats.reshape(M, S, D)      # view-only reshape, no HBM copy
    w_row = w.reshape(1, D).astype(jnp.float32)

    bytes_per_row = S * D * att_flat.dtype.itemsize
    tm = _pick_tm(M, bytes_per_row, target_block_bytes)
    grid = (M // tm,)                          # tm divides M: no padding needed
    s_chunk = min(S, 32)                       # 8..32 sublanes keeps temps tiny

    kernel = functools.partial(attinatt_kernel, s_chunk=s_chunk)

    out = pl.pallas_call(
        kernel,
        out_shape=jax.ShapeDtypeStruct((M, D), att_feats.dtype),
        grid_spec=pltpu.PrefetchScalarGridSpec(
            num_scalar_prefetch=0,
            grid=grid,
            in_specs=[
                pl.BlockSpec((tm, S, D), lambda i: (i, 0, 0)),   # batched rows
                pl.BlockSpec((1, D), lambda i: (0, 0)),          # weight, resident
            ],
            out_specs=pl.BlockSpec((tm, D), lambda i: (i, 0)),   # dense output slab
        ),
        compiler_params=pltpu.CompilerParams(
            dimension_semantics=("parallel",),     # shards grid across TCs on v7x
            vmem_limit_bytes=48 * 1024 * 1024,     # fits v5e/v6e (128 MiB) and v7x (64 MiB)
        ),
    )(att_flat, w_row)

    # TODO(synk): for deployments with D < 128, pad D to 128 upstream (or fold
    # groups of S rows into the lane axis) to avoid lane-padded blocks and
    # masked output stores.
    return out.reshape(B, N, D)


def attinatt_reference(att_feats, w, b):
    """Pure-JAX reference mirroring the PyTorch forward.

    Matmul-free on purpose: TPU default einsum precision (bf16 MXU passes)
    would otherwise perturb the f32 comparison at the 1e-3 level.
    """
    B, N = att_feats.shape[0], att_feats.shape[1]
    D = att_feats.shape[-1]
    S = att_feats.size // (B * N * D)
    att = att_feats.reshape(-1, S, D).astype(jnp.float32)
    logits = jnp.sum(jnp.tanh(att) * w.reshape(1, 1, D).astype(jnp.float32),
                     axis=-1) + b.astype(jnp.float32)[0]
    weight = jax.nn.softmax(logits, axis=-1)
    att_res = jnp.sum(weight[..., None] * att, axis=1)
    return att_res.reshape(B, N, D).astype(att_feats.dtype)


if __name__ == "__main__":
    # Small shapes consistent with the module's forward:
    # att_feats: (B, N, att_size, att_feat_size)
    B, N, S, D = 2, 4, 16, 32
    key = jax.random.PRNGKey(0)
    k1, k2, k3 = jax.random.split(key, 3)

    att_feats = jax.random.normal(k1, (B, N, S, D), dtype=jnp.float32)
    # Deterministic init of beta_net = nn.Linear(att_feat_size, 1)
    bound = 1.0 / (D ** 0.5)
    w = jax.random.uniform(k2, (1, D), minval=-bound, maxval=bound,
                           dtype=jnp.float32)
    b = jax.random.uniform(k3, (1,), minval=-bound, maxval=bound,
                           dtype=jnp.float32)

    out = attinatt_forward(att_feats, w, b)
    out = jax.block_until_ready(out)

    ref = attinatt_reference(att_feats, w, b)
    assert out.shape == (B, N, D)
    assert jnp.allclose(out, ref, atol=1e-4, rtol=1e-4), "mismatch vs reference"

    print("KERNEL_OK")
</pallas_src>

<mosaic_0001>
module attributes {stable_mosaic.version = 11 : i64} {
  func.func @attinatt_kernel(%arg0: i32, %arg1: memref<8x16x32xf32, #tpu.memory_space<vmem>>, %arg2: memref<1x32xf32, #tpu.memory_space<vmem>>, %arg3: memref<8x32xf32, #tpu.memory_space<vmem>>) attributes {dimension_semantics = [#tpu.dimension_semantics<parallel>], iteration_bounds = array<i64: 1>, scalar_prefetch = 0 : i64, scratch_operands = 0 : i64, tpu.core_type = #tpu.core_type<tc>, window_params = [{transform_indices = @transform_0, window_bounds = array<i64: 8, 16, 32>}, {pipeline_mode = #tpu.pipeline_mode<synchronous>, transform_indices = @transform_1, window_bounds = array<i64: 1, 32>}, {transform_indices = @transform_2, window_bounds = array<i64: 8, 32>}]} {
    %c0 = arith.constant 0 : index
    %c0_0 = arith.constant 0 : index
    %0 = vector.load %arg2[%c0, %c0_0] : memref<1x32xf32, #tpu.memory_space<vmem>>, vector<1x32xf32>
    %c0_1 = arith.constant 0 : index
    %c0_2 = arith.constant 0 : index
    %c0_3 = arith.constant 0 : index
    %1 = vector.load %arg1[%c0_1, %c0_2, %c0_3] : memref<8x16x32xf32, #tpu.memory_space<vmem>>, vector<8x16x32xf32>
    %2 = math.tanh %1 : vector<8x16x32xf32>
    %3 = vector.shape_cast %0 : vector<1x32xf32> to vector<1x1x32xf32>
    %4 = vector.broadcast %3 : vector<1x1x32xf32> to vector<8x16x32xf32>
    %5 = arith.mulf %2, %4 : vector<8x16x32xf32>
    %cst = arith.constant dense<0.000000e+00> : vector<8x16xf32>
    %6 = vector.multi_reduction <add>, %5, %cst [2] : vector<8x16x32xf32> to vector<8x16xf32>
    %cst_4 = arith.constant dense<0xFF800000> : vector<8xf32>
    %7 = vector.multi_reduction <maximumf>, %6, %cst_4 [1] : vector<8x16xf32> to vector<8xf32>
    %8 = vector.shape_cast %7 : vector<8xf32> to vector<8x1xf32>
    %9 = vector.broadcast %8 : vector<8x1xf32> to vector<8x16xf32>
    %10 = arith.subf %6, %9 : vector<8x16xf32>
    %11 = math.exp %10 : vector<8x16xf32>
    %cst_5 = arith.constant dense<0.000000e+00> : vector<8xf32>
    %12 = vector.multi_reduction <add>, %11, %cst_5 [1] : vector<8x16xf32> to vector<8xf32>
    %13 = vector.shape_cast %12 : vector<8xf32> to vector<8x1xf32>
    %14 = vector.shape_cast %11 : vector<8x16xf32> to vector<8x16x1xf32>
    %15 = vector.broadcast %14 : vector<8x16x1xf32> to vector<8x16x32xf32>
    %16 = arith.mulf %15, %1 : vector<8x16x32xf32>
    %cst_6 = arith.constant dense<0.000000e+00> : vector<8x32xf32>
    %17 = vector.multi_reduction <add>, %16, %cst_6 [1] : vector<8x16x32xf32> to vector<8x32xf32>
    %18 = vector.broadcast %13 : vector<8x1xf32> to vector<8x32xf32>
    %19 = arith.divf %17, %18 : vector<8x32xf32>
    %c0_7 = arith.constant 0 : index
    %c0_8 = arith.constant 0 : index
    %20 = vector.load %arg3[%c0_7, %c0_8] : memref<8x32xf32, #tpu.memory_space<vmem>>, vector<8x32xf32>
    tpu.vector_store %arg3[%c0_7, %c0_8], %19 {strides = array<i32>} : memref<8x32xf32, #tpu.memory_space<vmem>>, vector<8x32xf32>,
    return
  }
  func.func @transform_0(%arg0: i32) -> (i32, i32, i32) {
    %c0_i32 = arith.constant 0 : i32
    %c0_i32_0 = arith.constant 0 : i32
    %c0_i32_1 = arith.constant 0 : i32
    return %arg0, %c0_i32, %c0_i32_0 : i32, i32, i32
  }
  func.func @transform_1(%arg0: i32) -> (i32, i32) {
    %c0_i32 = arith.constant 0 : i32
    %c0_i32_0 = arith.constant 0 : i32
    %c0_i32_1 = arith.constant 0 : i32
    return %c0_i32, %c0_i32_0 : i32, i32
  }
  func.func @transform_2(%arg0: i32) -> (i32, i32) {
    %c0_i32 = arith.constant 0 : i32
    %c0_i32_0 = arith.constant 0 : i32
    return %arg0, %c0_i32 : i32, i32
  }
}

</mosaic_0001>

<bundles_post_ra>
// kernel: tpu_custom_call.1
= control target key start
LH: loop header
LB: loop body
LE: loop exit
PB: predicated region body
PF: predicated region fallthrough
CT: control target
= control target key end

     0   :  { %7 = vsyncpa [#allocation3], 0  ;;  %s1282_s0 = inlined_call_operand.hbm [shape: f32[8,16,32], index: 0, kind: input, shape index: {}]   ;;  %s1283_s1 = inlined_call_operand.hbm [shape: f32[1,32], index: 1, kind: input, shape index: {}]   ;;  %s1284_s2 = inlined_call_operand.hbm [shape: f32[8,32], index: 2, kind: output, shape index: {}]  }
   0x1   :  { %8 = vsyncpa [#allocation6], 0 }
   0x2   :  { %9 = vsyncpa [#allocation4], 0  ;;  %s14_s11 = sshll.u32 %s1282_s0, 4  ;;  %s820_s12 = smov [#allocation2]   ;;  %s15_s11 = int_to_ptr.hbm [resolvable:$true] %s14_s11 }
   0x3   :  { %s16_s13 = sshll.u32 %s820_s12, 4  ;;  %s28_s16 = sshll.u32 %s1283_s1, 4  ;;  %s17_s13 = int_to_ptr.vmem [resolvable:$true] %s16_s13  ;;  %s29_s16 = int_to_ptr.hbm [resolvable:$true] %s28_s16 }
   0x4   :  { %s821_s17 = smov 128   ;;  %s822_s18 = smov 8  }
   0x5   :  { %22 = dma.hbm_to_vmem [thread:$0]  %s15_s11, 2048, %s17_s13, [#allocation3], %s821_s17, %s821_s17, %s822_s18  }
   0x6   :  { %s823_s19 = smov [#allocation5]  }
   0x7   :  { %s30_s20 = sshll.u32 %s823_s19, 4  ;;  %s31_s20 = int_to_ptr.vmem [resolvable:$true] %s30_s20 }
   0x8   :  { %33 = dma.hbm_to_vmem [thread:$0]  %s29_s16, 16, %s31_s20, [#allocation6]  }
   0x9   :  { %814 = dma.done.wait [#allocation3], 2048  }
   0xa   :  { %815 = vsyncadd [#allocation3], 4294965248 }
   0xb   :  { %816 = dma.done.wait [#allocation6], 16  }
   0xc   :  { %817 = vsyncadd [#allocation6], 4294967280  ;;  %v847_v0 = vld [vmem:[#allocation2 + $0x20] sm:$0xff]  ;;  %v850_v1 = vld [vmem:[#allocation2 + $0x10] sm:$0xff]  ;;  %vm1285_vm0 = vcmask 261120   ;;  %vm164_vm1 = vcmask 130112  }
   0xd   :  { %662 = vtanh.f32 %v847_v0  ;;  %v852_v2 = vld [vmem:[#allocation2] sm:$0xff]  ;;  %v854_v3 = vld [vmem:[#allocation2 + $0x28] sm:$0xff]  ;;  %v857_v4 = vld [vmem:[#allocation2 + $0x18] sm:$0xff]  ;;  %vm1292_vm2 = vcmask 1041409   ;;  %vm1291_vm3 = vcmask 1042434   ;;  %vm1290_vm4 = vcmask 1043459  }
   0xe   :  { %664 = vtanh.f32 %v850_v1  ;;  %v860_v5 = vld [vmem:[#allocation2 + $0x8] sm:$0xff]  ;;  %v862_v6 = vld [vmem:[#allocation5] ss:$0 sm:$0xff]  ;;  %v871_v13 = vld [vmem:[#allocation2 + $0x38] sm:$0xff]  ;;  %vm1289_vm5 = vcmask 1044484   ;;  %vm1288_vm6 = vcmask 1045509  }
   0xf   :  { %666 = vtanh.f32 %v852_v2  ;;  %v868_v10 = vld [vmem:[#allocation2 + $0x40] sm:$0xff]  ;;  %v875_v17 = vld [vmem:[#allocation2 + $0x30] sm:$0xff]  ;;  %v886_v26 = vld [vmem:[#allocation2 + $0x58] sm:$0xff]  ;;  %vm1287_vm7 = vcmask 1046534   ;;  %vm1286_vm8 = vcmask 1047559   ;;  %vm202_vm9 = vcmask 130048  }
  0x10   :  { %668 = vtanh.f32 %v854_v3  ;;  %v889_v29 = vld [vmem:[#allocation2 + $0x50] sm:$0xff]  ;;  %v892_v32 = vld [vmem:[#allocation2 + $0x48] sm:$0xff]  ;;  %v907_v44 = vld [vmem:[#allocation2 + $0x60] sm:$0xff]  ;;  %s825_s0 = smov [#allocation7]   ;;  %s641_s23 = sshll.u32 %s1284_s2, 4  ;;  %s642_s23 = int_to_ptr.hbm [resolvable:$true] %s641_s23 }
  0x11   :  { %670 = vtanh.f32 %v857_v4  ;;  %v901_v38 = vld [vmem:[#allocation2 + $0x70] sm:$0xff]  ;;  %v904_v41 = vld [vmem:[#allocation2 + $0x68] sm:$0xff]  ;;  %v918_v54 = vld [vmem:[#allocation2 + $0x78] sm:$0xff]  ;;  %s639_s1 = sshll.u32 %s825_s0, 4  ;;  %s640_s1 = int_to_ptr.vmem [resolvable:$true] %s639_s1 }
  0x12   :  { %672 = vtanh.f32 %v860_v5 }
  0x13   :  { %v663_v7 = vpop.eup %662  ;;  %674 = vtanh.f32 %v868_v10 }
  0x14   :  { %v665_v8 = vpop.eup %664  ;;  %v82_v9 = vmul.f32 %v663_v7, %v862_v6  ;;  %676 = vtanh.f32 %v871_v13 }
  0x15   :  { %v667_v11 = vpop.eup %666  ;;  %v80_v12 = vmul.f32 %v665_v8, %v862_v6  ;;  %678 = vtanh.f32 %v875_v17 }
  0x16   :  { %v669_v14 = vpop.eup %668  ;;  %v107_v15 = vsel %vm1285_vm0, %v82_v9, 0.0  ;;  %v78_v16 = vmul.f32 %v667_v11, %v862_v6  ;;  %680 = vtanh.f32 %v886_v26 }
  0x17   :  { %v671_v18 = vpop.eup %670  ;;  %108 = vadd.xlane.f32.xlu2 %v107_v15  ;;  %v101_v19 = vsel %vm1285_vm0, %v80_v12, 0.0  ;;  %v83_v22 = vmul.f32 %v669_v14, %v862_v6  ;;  %682 = vtanh.f32 %v889_v29 }
  0x18   :  { %v673_v20 = vpop.eup %672  ;;  %102 = vadd.xlane.f32.xlu1 %v101_v19  ;;  %v95_v21 = vsel %vm1285_vm0, %v78_v16, 0.0  ;;  %v81_v23 = vmul.f32 %v671_v18, %v862_v6  ;;  %684 = vtanh.f32 %v892_v32 }
  0x19   :  { %96 = vadd.xlane.f32.xlu0 %v95_v21  ;;  %v79_v24 = vmul.f32 %v673_v20, %v862_v6  ;;  %v110_v25 = vsel %vm1285_vm0, %v83_v22, 0.0  ;;  %v675_v27 = vpop.eup %674  ;;  %686 = vtanh.f32 %v901_v38 }
  0x1a   :  { %v104_v28 = vsel %vm1285_vm0, %v81_v23, 0.0  ;;  %v677_v30 = vpop.eup %676  ;;  %v86_v34 = vmul.f32 %v675_v27, %v862_v6  ;;  %688 = vtanh.f32 %v904_v41 }
  0x1b   :  { %v98_v31 = vsel %vm1285_vm0, %v79_v24, 0.0  ;;  %v679_v33 = vpop.eup %678  ;;  %v85_v35 = vmul.f32 %v677_v30, %v862_v6  ;;  %690 = vtanh.f32 %v907_v44 }
  0x1c   :  { %v84_v36 = vmul.f32 %v679_v33, %v862_v6  ;;  %v119_v37 = vsel %vm1285_vm0, %v86_v34, 0.0  ;;  %v681_v39 = vpop.eup %680  ;;  %692 = vtanh.f32 %v918_v54 }
  0x1d   :  { %v116_v40 = vsel %vm1285_vm0, %v85_v35, 0.0  ;;  %v683_v42 = vpop.eup %682  ;;  %v89_v46 = vmul.f32 %v681_v39, %v862_v6 }
  0x1e   :  { %v113_v43 = vsel %vm1285_vm0, %v84_v36, 0.0  ;;  %v685_v45 = vpop.eup %684  ;;  %v88_v47 = vmul.f32 %v683_v42, %v862_v6 }
  0x1f   :  { %111 = vadd.xlane.f32.xlu2 %v110_v25  ;;  %v87_v48 = vmul.f32 %v685_v45, %v862_v6  ;;  %v128_v49 = vsel %vm1285_vm0, %v89_v46, 0.0  ;;  %v687_v50 = vpop.eup %686 }
  0x20   :  { %105 = vadd.xlane.f32.xlu1 %v104_v28  ;;  %v125_v51 = vsel %vm1285_vm0, %v88_v47, 0.0  ;;  %v689_v52 = vpop.eup %688  ;;  %v92_v56 = vmul.f32 %v687_v50, %v862_v6 }
  0x21   :  { %99 = vadd.xlane.f32.xlu0 %v98_v31  ;;  %v122_v53 = vsel %vm1285_vm0, %v87_v48, 0.0  ;;  %v691_v55 = vpop.eup %690  ;;  %v91_v57 = vmul.f32 %v689_v52, %v862_v6 }
  0x22   :  { %v90_v58 = vmul.f32 %v691_v55, %v862_v6  ;;  %v137_v59 = vsel %vm1285_vm0, %v92_v56, 0.0  ;;  %v693_v62 = vpop.eup %692 }
  0x23   :  { %v134_v60 = vsel %vm1285_vm0, %v91_v57, 0.0  ;;  %v93_v63 = vmul.f32 %v693_v62, %v862_v6  ;;  %v159_v6 = vlaneseq }
  0x24   :  { %v131_v61 = vsel %vm1285_vm0, %v90_v58, 0.0 }
  0x25   :  { %v140_v7 = vsel %vm1285_vm0, %v93_v63, 0.0  ;;  %v947_v20 = vand.u32 127, %v159_v6 }
  0x27   :  { %120 = vadd.xlane.f32.xlu2 %v119_v37  ;;  %v950_v21 = vadd.s32 4294967288, %v947_v20 }
  0x28   :  { %117 = vadd.xlane.f32.xlu1 %v116_v40 }
  0x29   :  { %114 = vadd.xlane.f32.xlu0 %v113_v43 }
  0x2f   :  { %129 = vadd.xlane.f32.xlu2 %v128_v49 }
  0x30   :  { %126 = vadd.xlane.f32.xlu1 %v125_v51 }
  0x31   :  { %123 = vadd.xlane.f32.xlu0 %v122_v53 }
  0x37   :  { %138 = vadd.xlane.f32.xlu2 %v137_v59 }
  0x38   :  { %135 = vadd.xlane.f32.xlu1 %v134_v60 }
  0x39   :  { %132 = vadd.xlane.f32.xlu0 %v131_v61 }
  0x41   :  { %141 = vadd.xlane.f32.xlu0 %v140_v7 }
  0x8a   :  { %v929_v8 = vpop.xlane.xlu2 %108 }
  0x8b   :  { %v931_v9 = vpop.xlane.xlu1 %102  ;;  %v169_v31 = vperm.slane %v929_v8, %v947_v20 }
  0x8c   :  { %v933_v11 = vpop.xlane.xlu0 %96  ;;  %v166_v24 = vperm.slane %v931_v9, %v947_v20 }
  0x8d   :  { %v161_v30 = vperm.slane %v933_v11, %v947_v20 }
  0x92   :  { %v937_v14 = vpop.xlane.xlu2 %111 }
  0x93   :  { %v935_v12 = vpop.xlane.xlu1 %105  ;;  %v170_v33 = vperm.slane %v937_v14, %v950_v21 }
  0x94   :  { %v939_v15 = vpop.xlane.xlu0 %99  ;;  %v167_v25 = vperm.slane %v935_v12, %v950_v21 }
  0x95   :  { %v163_v27 = vperm.slane %v939_v15, %v950_v21  ;;  %v171_v45 = vsel %vm164_vm1, %v170_v33, %v169_v31 }
  0x96   :  { %v168_v34 = vsel %vm164_vm1, %v167_v25, %v166_v24 }
  0x97   :  { %v165_v35 = vsel %vm164_vm1, %v163_v27, %v161_v30  ;;  %v824_v27 = vmov 0  }
  0x98   :  { %v188_v46 = vsel %vm1292_vm2, %v168_v34, %v165_v35  ;;  %660 = vset.pattern.permute.xlu1 %v824_v27  ;;  %659 = vset.pattern.permute.xlu0 %v824_v27 }
  0x99   :  { %v190_v55 = vsel %vm1291_vm3, %v171_v45, %v188_v46  ;;  %658 = vset.pattern.permute.xlu2 %v824_v27 }
  0x9a   :  { %v945_v19 = vpop.xlane.xlu2 %120 }
  0x9b   :  { %v941_v16 = vpop.xlane.xlu1 %117  ;;  %v175_v39 = vperm.slane %v945_v19, %v947_v20 }
  0x9c   :  { %v943_v18 = vpop.xlane.xlu0 %114  ;;  %v173_v36 = vperm.slane %v941_v16, %v950_v21 }
  0x9d   :  { %v172_v37 = vperm.slane %v943_v18, %v947_v20 }
  0x9f   :  { %v174_v47 = vsel %vm164_vm1, %v173_v36, %v172_v37 }
  0xa0   :  { %v192_v56 = vsel %vm1290_vm4, %v174_v47, %v190_v55 }
  0xa2   :  { %v962_v28 = vpop.xlane.xlu2 %129 }
  0xa3   :  { %v952_v22 = vpop.xlane.xlu1 %126  ;;  %v179_v49 = vperm.slane %v962_v28, %v950_v21 }
  0xa4   :  { %v954_v23 = vpop.xlane.xlu0 %123  ;;  %v178_v48 = vperm.slane %v952_v22, %v947_v20 }
  0xa5   :  { %v176_v40 = vperm.slane %v954_v23, %v950_v21 }
  0xa6   :  { %v180_v57 = vsel %vm164_vm1, %v179_v49, %v178_v48 }
  0xa7   :  { %v177_v50 = vsel %vm164_vm1, %v176_v40, %v175_v39 }
  0xa8   :  { %v194_v59 = vsel %vm1289_vm5, %v177_v50, %v192_v56 }
  0xa9   :  { %v196_v63 = vsel %vm1288_vm6, %v180_v57, %v194_v59 }
  0xaa   :  { %v996_v53 = vpop.xlane.xlu2 %138 }
  0xab   :  { %v982_v43 = vpop.xlane.xlu1 %135  ;;  %v184_v58 = vperm.slane %v996_v53, %v947_v20 }
  0xac   :  { %v980_v42 = vpop.xlane.xlu0 %132  ;;  %v182_v51 = vperm.slane %v982_v43, %v950_v21 }
  0xad   :  { %v181_v52 = vperm.slane %v980_v42, %v947_v20 }
  0xaf   :  { %v183_v61 = vsel %vm164_vm1, %v182_v51, %v181_v52 }
  0xb0   :  { %v198_v6 = vsel %vm1287_vm7, %v183_v61, %v196_v63 }
  0xb4   :  { %v1004_v60 = vpop.xlane.xlu0 %141 }
  0xb5   :  { %v185_v62 = vperm.slane %v1004_v60, %v950_v21 }
  0xb7   :  { %v186_v7 = vsel %vm164_vm1, %v185_v62, %v184_v58 }
  0xb8   :  { %v200_v24 = vsel %vm1286_vm8, %v186_v7, %v198_v6 }
  0xb9   :  { %v203_v25 = vsel %vm202_vm9, %v200_v24, -inf }
  0xba   :  { %204 = vmax.xlane.f32.xlu1 %v203_v25 }
 0x12d   :  { %v1014_v30 = vpop.xlane.xlu1 %204 }
 0x12e   :  { %v208_v31 = vperm.slane %v1014_v30, 1  ;;  %v207_v33 = vperm.slane %v1014_v30, 0  ;;  %v209_v37 = vperm.slane %v1014_v30, 2  ;;  %v211_v39 = vperm.slane %v1014_v30, 4 }
 0x12f   :  { %v212_v50 = vperm.slane %v1014_v30, 5  ;;  %v214_v59 = vperm.slane %v1014_v30, 7  ;;  %v213_v24 = vperm.slane %v1014_v30, 6 }
 0x130   :  { %v225_v34 = vsub.f32 %v931_v9, %v208_v31  ;;  %v224_v35 = vsub.f32 %v939_v15, %v207_v33  ;;  %v223_v36 = vsub.f32 %v933_v11, %v207_v33  ;;  %v228_v47 = vsub.f32 %v937_v14, %v209_v37 }
 0x131   :  { %v231_v48 = vsub.f32 %v945_v19, %v211_v39  ;;  %v226_v9 = vsub.f32 %v935_v12, %v208_v31  ;;  %v210_v15 = vperm.slane %v1014_v30, 3  ;;  %v234_v19 = vsub.f32 %v962_v28, %v212_v50 }
 0x132   :  { %v243_v40 = vmul.f32 1.442695, %v225_v34  ;;  %v241_v45 = vmul.f32 1.442695, %v224_v35  ;;  %v239_v46 = vmul.f32 1.442695, %v223_v36  ;;  %v227_v12 = vsub.f32 %v929_v8, %v209_v37 }
 0x133   :  { %v249_v49 = vmul.f32 1.442695, %v228_v47  ;;  %v255_v11 = vmul.f32 1.442695, %v231_v48  ;;  %v245_v52 = vmul.f32 1.442695, %v226_v9  ;;  %v230_v14 = vsub.f32 %v941_v16, %v210_v15 }
 0x134   :  { %694 = vpow2.f32 %v243_v40  ;;  %v261_v58 = vmul.f32 1.442695, %v234_v19  ;;  %v247_v62 = vmul.f32 1.442695, %v227_v12  ;;  %v233_v16 = vsub.f32 %v952_v22, %v212_v50 }
 0x135   :  { %696 = vpow2.f32 %v241_v45  ;;  %v253_v57 = vmul.f32 1.442695, %v230_v14  ;;  %v237_v28 = vsub.f32 %v996_v53, %v214_v59  ;;  %v229_v8 = vsub.f32 %v943_v18, %v210_v15 }
 0x136   :  { %698 = vpow2.f32 %v239_v46  ;;  %v259_v6 = vmul.f32 1.442695, %v233_v16  ;;  %v236_v22 = vsub.f32 %v982_v43, %v213_v24  ;;  %v232_v53 = vsub.f32 %v954_v23, %v211_v39 }
 0x137   :  { %700 = vpow2.f32 %v249_v49  ;;  %v267_v25 = vmul.f32 1.442695, %v237_v28  ;;  %v251_v31 = vmul.f32 1.442695, %v229_v8  ;;  %v235_v40 = vsub.f32 %v980_v42, %v213_v24 }
 0x138   :  { %702 = vpow2.f32 %v255_v11  ;;  %v265_v35 = vmul.f32 1.442695, %v236_v22  ;;  %v257_v36 = vmul.f32 1.442695, %v232_v53  ;;  %v238_v23 = vsub.f32 %v1004_v60, %v214_v59 }
 0x139   :  { %704 = vpow2.f32 %v245_v52  ;;  %v263_v46 = vmul.f32 1.442695, %v235_v40 }
 0x13a   :  { %v695_v51 = vpop.eup %694  ;;  %706 = vpow2.f32 %v253_v57  ;;  %v269_v39 = vmul.f32 1.442695, %v238_v23 }
 0x13b   :  { %v697_v55 = vpop.eup %696  ;;  %294 = vperm.xlu1 %660, %v695_v51   ;;  %708 = vpow2.f32 %v261_v58 }
 0x13c   :  { %v699_v56 = vpop.eup %698  ;;  %291 = vperm.xlu0 %659, %v697_v55   ;;  %710 = vpow2.f32 %v247_v62 }
 0x13d   :  { %288 = vperm.xlu2 %658, %v699_v56   ;;  %v701_v61 = vpop.eup %700  ;;  %712 = vpow2.f32 %v259_v6 }
 0x13e   :  { %v703_v63 = vpop.eup %702  ;;  %714 = vpow2.f32 %v267_v25 }
 0x13f   :  { %v705_v7 = vpop.eup %704  ;;  %716 = vpow2.f32 %v251_v31 }
 0x140   :  { %v707_v27 = vpop.eup %706  ;;  %718 = vpow2.f32 %v265_v35 }
 0x141   :  { %v709_v33 = vpop.eup %708  ;;  %720 = vpow2.f32 %v257_v36 }
 0x142   :  { %v711_v34 = vpop.eup %710  ;;  %722 = vpow2.f32 %v263_v46 }
 0x143   :  { %303 = vperm.xlu1 %660, %v701_v61   ;;  %v713_v18 = vpop.eup %712  ;;  %724 = vpow2.f32 %v269_v39 }
 0x144   :  { %312 = vperm.xlu0 %659, %v703_v63   ;;  %v715_v37 = vpop.eup %714 }
 0x145   :  { %297 = vperm.xlu2 %658, %v705_v7   ;;  %v717_v30 = vpop.eup %716 }
 0x146   :  { %v719_v45 = vpop.eup %718 }
 0x147   :  { %v721_v43 = vpop.eup %720 }
 0x148   :  { %v723_v47 = vpop.eup %722 }
 0x149   :  { %v725_v48 = vpop.eup %724 }
 0x14b   :  { %309 = vperm.xlu1 %660, %v707_v27  }
 0x14c   :  { %321 = vperm.xlu0 %659, %v709_v33  }
 0x14d   :  { %300 = vperm.xlu2 %658, %v711_v34  }
 0x153   :  { %318 = vperm.xlu1 %660, %v713_v18  }
 0x154   :  { %330 = vperm.xlu0 %659, %v715_v37  }
 0x155   :  { %306 = vperm.xlu2 %658, %v717_v30  }
 0x15b   :  { %327 = vperm.xlu1 %660, %v719_v45  }
 0x15d   :  { %315 = vperm.xlu2 %658, %v721_v43  }
 0x165   :  { %324 = vperm.xlu2 %658, %v723_v47  }
 0x16d   :  { %333 = vperm.xlu2 %658, %v725_v48  }
 0x197   :  { %v289_v9 = vpop.permute.xlu2 %288 }
 0x198   :  { %v386_v42 = vmul.f32 %v289_v9, %v852_v2  ;;  %v335_v53 = vperm.slane %v289_v9, %v947_v20 }
 0x19a   :  { %v402_v19 = vsel %vm1285_vm0, %v386_v42, 0.0 }
 0x19f   :  { %v298_v49 = vpop.permute.xlu2 %297 }
 0x1a0   :  { %v389_v11 = vmul.f32 %v298_v49, %v857_v4  ;;  %v339_v35 = vperm.slane %v298_v49, %v950_v21 }
 0x1a2   :  { %v412_v56 = vsel %vm1285_vm0, %v389_v11, 0.0 }
 0x1a7   :  { %v301_v15 = vpop.permute.xlu2 %300 }
 0x1a8   :  { %v390_v2 = vmul.f32 %v301_v15, %v847_v0  ;;  %v341_v36 = vperm.slane %v301_v15, %v947_v20 }
 0x1aa   :  { %v420_v62 = vsel %vm1285_vm0, %v390_v2, 0.0 }
 0x1ad   :  { %v295_v50 = vpop.permute.xlu1 %294 }
 0x1ae   :  { %v388_v51 = vmul.f32 %v295_v50, %v850_v1  ;;  %v292_v52 = vpop.permute.xlu0 %291  ;;  %v338_v34 = vperm.slane %v295_v50, %v947_v20 }
 0x1af   :  { %v387_v55 = vmul.f32 %v292_v52, %v860_v5  ;;  %v307_v60 = vpop.permute.xlu2 %306 }
 0x1b0   :  { %v411_v14 = vsel %vm1285_vm0, %v388_v51, 0.0  ;;  %v392_v8 = vmul.f32 %v307_v60, %v875_v17  ;;  %v340_v40 = vsel %vm164_vm1, %v339_v35, %v338_v34  ;;  %v344_v46 = vperm.slane %v307_v60, %v947_v20 }
 0x1b1   :  { %v1047_v12 = vadd.f32 %v412_v56, %v411_v14  ;;  %v403_v57 = vsel %vm1285_vm0, %v387_v55, 0.0 }
 0x1b2   :  { %v1050_v4 = vadd.f32 %v403_v57, %v402_v19  ;;  %v429_v27 = vsel %vm1285_vm0, %v392_v8, 0.0 }
 0x1b5   :  { %v304_v58 = vpop.permute.xlu1 %303 }
 0x1b6   :  { %v391_v1 = vmul.f32 %v304_v58, %v854_v3  ;;  %v313_v59 = vpop.permute.xlu0 %312  ;;  %v342_v17 = vperm.slane %v304_v58, %v950_v21 }
 0x1b7   :  { %v394_v5 = vmul.f32 %v313_v59, %v868_v10  ;;  %v316_v61 = vpop.permute.xlu2 %315 }
 0x1b8   :  { %v421_v63 = vsel %vm1285_vm0, %v391_v1, 0.0  ;;  %v395_v28 = vmul.f32 %v316_v61, %v892_v32  ;;  %v336_v32 = vperm.slane %v292_v52, %v950_v21  ;;  %v343_v23 = vsel %vm164_vm1, %v342_v17, %v341_v36 }
 0x1b9   :  { %v1057_v7 = vadd.f32 %v421_v63, %v420_v62  ;;  %v438_v16 = vsel %vm1285_vm0, %v394_v5, 0.0  ;;  %v348_v42 = vperm.slane %v316_v61, %v950_v21 }
 0x1ba   :  { %v439_v0 = vsel %vm1285_vm0, %v395_v28, 0.0  ;;  %v337_v45 = vsel %vm164_vm1, %v336_v32, %v335_v53 }
 0x1bb   :  { %v1063_v6 = vadd.f32 %v439_v0, %v438_v16  ;;  %v359_v11 = vsel %vm1292_vm2, %v340_v40, %v337_v45  ;;  %v423_v8 = vrot.slane %v1057_v7, 4 }
 0x1bc   :  { %v360_v51 = vsel %vm1291_vm3, %v343_v23, %v359_v11 }
 0x1bd   :  { %v310_v3 = vpop.permute.xlu1 %309  ;;  %v441_v0 = vrot.slane %v1063_v6, 4 }
 0x1be   :  { %v393_v10 = vmul.f32 %v310_v3, %v871_v13  ;;  %v322_v24 = vpop.permute.xlu0 %321  ;;  %v345_v13 = vperm.slane %v310_v3, %v950_v21 }
 0x1bf   :  { %v325_v25 = vpop.permute.xlu2 %324  ;;  %v397_v22 = vmul.f32 %v322_v24, %v886_v26  ;;  %v351_v52 = vperm.slane %v322_v24, %v950_v21  ;;  %v442_v32 = vadd.f32 %v441_v0, %v1063_v6 }
 0x1c0   :  { %v430_v31 = vsel %vm1285_vm0, %v393_v10, 0.0  ;;  %v353_v2 = vperm.slane %v325_v25, %v947_v20  ;;  %v398_v3 = vmul.f32 %v325_v25, %v907_v44 }
 0x1c1   :  { %v431_v33 = vadd.f32 %v430_v31, %v429_v27  ;;  %v448_v39 = vsel %vm1285_vm0, %v397_v22, 0.0  ;;  %v443_v25 = vrot.slane %v442_v32, 2 }
 0x1c2   :  { %v456_v17 = vsel %vm1285_vm0, %v398_v3, 0.0 }
 0x1c3   :  { %v432_v10 = vrot.slane %v431_v33, 4 }
 0x1c5   :  { %v319_v18 = vpop.permute.xlu1 %318  ;;  %v433_v22 = vadd.f32 %v432_v10, %v431_v33 }
 0x1c6   :  { %v396_v37 = vmul.f32 %v319_v18, %v889_v29  ;;  %v331_v30 = vpop.permute.xlu0 %330  ;;  %v346_v29 = vsel %vm164_vm1, %v345_v13, %v344_v46  ;;  %v350_v9 = vperm.slane %v319_v18, %v947_v20 }
 0x1c7   :  { %v400_v26 = vmul.f32 %v331_v30, %v901_v38  ;;  %v334_v43 = vpop.permute.xlu2 %333  ;;  %v347_v38 = vperm.slane %v313_v59, %v947_v20  ;;  %v361_v55 = vsel %vm1290_vm4, %v346_v29, %v360_v51  ;;  %v356_v56 = vperm.slane %v331_v30, %v947_v20 }
 0x1c8   :  { %v447_v47 = vsel %vm1285_vm0, %v396_v37, 0.0  ;;  %v401_v48 = vmul.f32 %v334_v43, %v918_v54  ;;  %v352_v60 = vsel %vm164_vm1, %v351_v52, %v350_v9  ;;  %v357_v14 = vperm.slane %v334_v43, %v950_v21 }
 0x1c9   :  { %v449_v49 = vadd.f32 %v448_v39, %v447_v47  ;;  %v465_v15 = vsel %vm1285_vm0, %v400_v26, 0.0  ;;  %v349_v57 = vsel %vm164_vm1, %v348_v42, %v347_v38  ;;  %v414_v20 = vrot.slane %v1047_v12, 4 }
 0x1ca   :  { %v466_v50 = vsel %vm1285_vm0, %v401_v48, 0.0  ;;  %v362_v1 = vsel %vm1289_vm5, %v349_v57, %v361_v55  ;;  %v358_v61 = vsel %vm164_vm1, %v357_v14, %v356_v56  ;;  %v434_v36 = vrot.slane %v433_v22, 2 }
 0x1cb   :  { %v467_v54 = vadd.f32 %v466_v50, %v465_v15  ;;  %v363_v5 = vsel %vm1288_vm6, %v352_v60, %v362_v1  ;;  %v450_v24 = vrot.slane %v449_v49, 4  ;;  %v415_v31 = vadd.f32 %v414_v20, %v1047_v12 }
 0x1cc   :  { %v435_v46 = vadd.f32 %v434_v36, %v433_v22 }
 0x1cd   :  { %v328_v19 = vpop.permute.xlu1 %327  ;;  %v451_v53 = vadd.f32 %v450_v24, %v449_v49  ;;  %v416_v13 = vrot.slane %v415_v31, 2  ;;  %v468_v26 = vrot.slane %v467_v54, 4 }
 0x1ce   :  { %v354_v58 = vperm.slane %v328_v19, %v950_v21  ;;  %v399_v28 = vmul.f32 %v328_v19, %v904_v41  ;;  %v405_v21 = vrot.slane %v1050_v4, 4  ;;  %v424_v41 = vadd.f32 %v423_v8, %v1057_v7 }
 0x1cf   :  { %v452_v37 = vrot.slane %v451_v53, 2  ;;  %v417_v40 = vadd.f32 %v416_v13, %v415_v31  ;;  %v436_v47 = vrot.slane %v435_v46, 1  ;;  %v1120_v29 = vadd.f32 %v468_v26, %v467_v54 }
 0x1d0   :  { %v355_v59 = vsel %vm164_vm1, %v354_v58, %v353_v2  ;;  %v457_v27 = vsel %vm1285_vm0, %v399_v28, 0.0  ;;  %v406_v34 = vadd.f32 %v405_v21, %v1050_v4  ;;  %v425_v44 = vrot.slane %v424_v41, 2 }
 0x1d1   :  { %v364_v62 = vsel %vm1287_vm7, %v355_v59, %v363_v5  ;;  %v458_v35 = vadd.f32 %v457_v27, %v456_v17  ;;  %v444_v4 = vadd.f32 %v443_v25, %v442_v32  ;;  %v453_v7 = vadd.f32 %v452_v37, %v451_v53 }
 0x1d2   :  { %v365_v63 = vsel %vm1286_vm8, %v358_v61, %v364_v62  ;;  %v407_v18 = vrot.slane %v406_v34, 2  ;;  %v426_v45 = vadd.f32 %v425_v44, %v424_v41  ;;  %v418_v43 = vrot.slane %v417_v40, 1 }
 0x1d3   :  { %v367_v16 = vsel %vm202_vm9, %v365_v63, 0.0  ;;  %v459_v30 = vrot.slane %v458_v35, 4  ;;  %v445_v39 = vrot.slane %v444_v4, 1  ;;  %v454_v48 = vrot.slane %v453_v7, 1 }
 0x1d4   :  { %368 = vadd.xlane.f32.xlu1 %v367_v16  ;;  %v408_v12 = vadd.f32 %v407_v18, %v406_v34  ;;  %v427_v33 = vrot.slane %v426_v45, 1  ;;  %v1134_v42 = vadd.f32 %v418_v43, %v417_v40  ;;  %v1146_v55 = vadd.f32 %v436_v47, %v435_v46 }
 0x1d5   :  { %v460_v6 = vadd.f32 %v459_v30, %v458_v35  ;;  %v1144_v54 = vadd.f32 %v445_v39, %v444_v4  ;;  %v470_v60 = vrot.slane %v1120_v29, 2  ;;  %v1150_v56 = vadd.f32 %v454_v48, %v453_v7 }
 0x1d6   :  { %v409_v23 = vrot.slane %v408_v12, 1  ;;  %v1138_v51 = vadd.f32 %v427_v33, %v426_v45 }
 0x1d7   :  { %v461_v9 = vrot.slane %v460_v6, 2 }
 0x1d8   :  { %v1136_v50 = vadd.f32 %v409_v23, %v408_v12 }
 0x1d9   :  { %v1152_v14 = vadd.f32 %v461_v9, %v460_v6 }
 0x247   :  { %v1122_v49 = vpop.xlane.xlu1 %368 }
 0x248   :  { %v1125_v15 = vrot.slane %v1122_v49, 1  ;;  %v1128_v11 = vrot.slane %v1122_v49, 2  ;;  %v1131_v38 = vrot.slane %v1122_v49, 3  ;;  %726 = vrcp.f32 %v1122_v49 }
 0x249   :  { %v1142_v52 = vrot.slane %v1122_v49, 4  ;;  %v501_v19 = vand.u32 2147483648, %v1122_v49  ;;  %v1157_v57 = vrot.slane %v1122_v49, 5  ;;  %v1160_v2 = vrot.slane %v1122_v49, 6 }
 0x24a   :  { %728 = vrcp.f32 %v1125_v15  ;;  %v514_v58 = vand.u32 2147483647, %v1125_v15  ;;  %v516_v1 = vand.u32 2147483648, %v1125_v15  ;;  %v1167_v5 = vrot.slane %v1122_v49, 7 }
 0x24b   :  { %730 = vrcp.f32 %v1128_v11  ;;  %vm495_vm10 = vweird.f32 %v1122_v49  ;;  %v529_v61 = vand.u32 2147483647, %v1128_v11  ;;  %v499_v63 = vand.u32 2147483647, %v1122_v49 }
 0x24c   :  { %732 = vrcp.f32 %v1131_v38  ;;  %vm510_vm11 = vweird.f32 %v1125_v15  ;;  %v531_v16 = vand.u32 2147483648, %v1128_v11  ;;  %v1177_v20 = vor.u32 1.1754944e-38, %v501_v19 }
 0x24d   :  { %734 = vrcp.f32 %v1142_v52  ;;  %vm525_vm12 = vweird.f32 %v1128_v11  ;;  %v544_v21 = vand.u32 2147483647, %v1131_v38  ;;  %v546_v8 = vand.u32 2147483648, %v1131_v38 }
 0x24e   :  { %v1164_v59 = vpop.eup %726  ;;  %vm1183_vm13 = vcmp.eq.f32.partialorder %v514_v58, 8.507059e+37  ;;  %v517_v27 = vor.u32 1.1754944e-38, %v516_v1  ;;  %vm540_vm14 = vweird.f32 %v1131_v38  ;;  %vm1190_vm1 = vcmp.eq.f32.partialorder %v529_v61, 8.507059e+37 }
 0x24f   :  { %v491_v62 = vmul.f32 %v1164_v59, %v1122_v49  ;;  %vm496_vm15 = vweird.f32 %v1164_v59  ;;  %736 = vrcp.f32 %v1157_v57  ;;  %v532_v22 = vor.u32 1.1754944e-38, %v531_v16 }
 0x250   :  { %v729_v28 = vpop.eup %728  ;;  %vm1197_vm9 = vcmp.eq.f32.partialorder %v499_v63, 8.507059e+37  ;;  %vm1201_vm0 = vcmp.eq.f32.partialorder %v544_v21, 8.507059e+37  ;;  %v547_v25 = vor.u32 1.1754944e-38, %v546_v8  ;;  %v559_v36 = vand.u32 2147483647, %v1142_v52  ;;  %vm1213_vm6 = vmor %vm495_vm10, %vm496_vm15 }
 0x251   :  { %v731_v0 = vpop.eup %730  ;;  %v492_v3 = vsub.f32 1.0, %v491_v62  ;;  %v506_v10 = vmul.f32 %v729_v28, %v1125_v15  ;;  %vm511_vm8 = vweird.f32 %v729_v28  ;;  %v561_v4 = vand.u32 2147483648, %v1142_v52 }
 0x252   :  { %v733_v31 = vpop.eup %732  ;;  %v521_v34 = vmul.f32 %v731_v0, %v1128_v11  ;;  %vm526_vm7 = vweird.f32 %v731_v0  ;;  %vm512_vm4 = vmor %vm510_vm11, %vm511_vm8  ;;  %vm555_vm3 = vweird.f32 %v1142_v52  ;;  %vm1220_vm2 = vcmp.eq.f32.partialorder %v559_v36, 8.507059e+37 }
 0x253   :  { %v493_v32 = vmul.f32 %v1164_v59, %v492_v3  ;;  %v507_v17 = vsub.f32 1.0, %v506_v10  ;;  %v536_v53 = vmul.f32 %v733_v31, %v1131_v38  ;;  %v735_v35 = vpop.eup %734  ;;  %vm541_vm5 = vweird.f32 %v733_v31  ;;  %vm527_vm10 = vmor %vm525_vm12, %vm526_vm7 }
 0x254   :  { %v522_v18 = vsub.f32 1.0, %v521_v34  ;;  %v551_v40 = vmul.f32 %v735_v35, %v1142_v52  ;;  %738 = vrcp.f32 %v1160_v2  ;;  %vm556_vm15 = vweird.f32 %v735_v35  ;;  %vm542_vm8 = vmor %vm540_vm14, %vm541_vm5 }
 0x255   :  { %v508_v37 = vmul.f32 %v729_v28, %v507_v17  ;;  %v537_v30 = vsub.f32 1.0, %v536_v53  ;;  %v494_v12 = vadd.f32 %v1164_v59, %v493_v32  ;;  %v737_v43 = vpop.eup %736  ;;  %v562_v61 = vor.u32 1.1754944e-38, %v561_v4 }
 0x256   :  { %v523_v45 = vmul.f32 %v731_v0, %v522_v18  ;;  %v552_v6 = vsub.f32 1.0, %v551_v40  ;;  %v566_v19 = vmul.f32 %v737_v43, %v1157_v57  ;;  %v574_v63 = vand.u32 2147483647, %v1157_v57 }
 0x257   :  { %v509_v7 = vadd.f32 %v729_v28, %v508_v37  ;;  %v538_v26 = vmul.f32 %v733_v31, %v537_v30  ;;  %v498_v9 = vsel %vm1213_vm6, %v1164_v59, %v494_v12  ;;  %v576_v38 = vand.u32 2147483648, %v1157_v57 }
 0x258   :  { %v524_v23 = vadd.f32 %v731_v0, %v523_v45  ;;  %v553_v48 = vmul.f32 %v735_v35, %v552_v6  ;;  %v567_v59 = vsub.f32 1.0, %v566_v19  ;;  %v503_v16 = vsel %vm1197_vm9, %v1177_v20, %v498_v9 }
 0x259   :  { %v513_v39 = vsel %vm512_vm4, %v729_v28, %v509_v7  ;;  %v539_v47 = vadd.f32 %v733_v31, %v538_v26  ;;  %vm557_vm4 = vmor %vm555_vm3, %vm556_vm15  ;;  %740 = vrcp.f32 %v1167_v5  ;;  %v463_v10 = vrot.slane %v1152_v14, 1 }
 0x25a   :  { %v518_v49 = vsel %vm1183_vm13, %v517_v27, %v513_v39  ;;  %v528_v15 = vsel %vm527_vm10, %v731_v0, %v524_v23  ;;  %v554_v1 = vadd.f32 %v735_v35, %v553_v48  ;;  %v739_v0 = vpop.eup %738  ;;  %v568_v52 = vmul.f32 %v737_v43, %v567_v59 }
 0x25b   :  { %v533_v11 = vsel %vm1190_vm1, %v532_v22, %v528_v15  ;;  %v543_v58 = vsel %vm542_vm8, %v733_v31, %v539_v47  ;;  %v519_v28 = vmul.f32 %v518_v49, %v1134_v42  ;;  %vm570_vm3 = vweird.f32 %v1157_v57 }
 0x25c   :  { %v548_v62 = vsel %vm1201_vm0, %v547_v25, %v543_v58  ;;  %v534_v21 = vmul.f32 %v533_v11, %v1138_v51  ;;  %v558_v8 = vsel %vm557_vm4, %v735_v35, %v554_v1  ;;  %vm571_vm0 = vweird.f32 %v737_v43 }
 0x25d   :  { %v563_v3 = vsel %vm1220_vm2, %v562_v61, %v558_v8  ;;  %v549_v24 = vmul.f32 %v548_v62, %v1146_v55  ;;  %v581_v20 = vmul.f32 %v739_v0, %v1160_v2  ;;  %v569_v51 = vadd.f32 %v737_v43, %v568_v52  ;;  %vm572_vm2 = vmor %vm570_vm3, %vm571_vm0 }
 0x25e   :  { %v564_v42 = vmul.f32 %v563_v3, %v1144_v54  ;;  %vm575_vm5 = vcmp.eq.f32.partialorder %v574_v63, 8.507059e+37  ;;  %v577_v27 = vor.u32 1.1754944e-38, %v576_v38  ;;  %v504_v31 = vmul.f32 %v503_v16, %v1136_v50 }
 0x25f   :  { %v582_v34 = vsub.f32 1.0, %v581_v20  ;;  %v618_v41 = vrot.slane %v519_v28, 7  ;;  %v620_v32 = vrot.slane %v534_v21, 6  ;;  %v573_v17 = vsel %vm572_vm2, %v737_v43, %v569_v51  ;;  %v741_v13 = vpop.eup %740 }
 0x260   :  { %vm586_vm6 = vweird.f32 %v739_v0  ;;  %v589_v22 = vand.u32 2147483647, %v1160_v2  ;;  %v591_v55 = vand.u32 2147483648, %v1160_v2  ;;  %v578_v57 = vsel %vm575_vm5, %v577_v27, %v573_v17 }
 0x261   :  { %v583_v53 = vmul.f32 %v739_v0, %v582_v34  ;;  %vm1305_vm7 = vcmask 1041409   ;;  %v622_v54 = vrot.slane %v549_v24, 5  ;;  %v471_v50 = vadd.f32 %v470_v60, %v1120_v29 }
 0x262   :  { %v619_v35 = vsel %vm1305_vm7, %v618_v41, %v504_v31  ;;  %v579_v18 = vmul.f32 %v578_v57, %v1150_v56  ;;  %vm1306_vm11 = vcmask 1042434   ;;  %v624_v25 = vrot.slane %v564_v42, 4 }
 0x263   :  { %v621_v44 = vsel %vm1306_vm11, %v620_v32, %v619_v35  ;;  %v584_v36 = vadd.f32 %v739_v0, %v583_v53  ;;  %vm585_vm12 = vweird.f32 %v1160_v2  ;;  %v596_v37 = vmul.f32 %v741_v13, %v1167_v5 }
 0x264   :  { %vm1307_vm13 = vcmask 1043459   ;;  %vm587_vm14 = vmor %vm585_vm12, %vm586_vm6  ;;  %v592_v40 = vor.u32 1.1754944e-38, %v591_v55  ;;  %vm1308_vm1 = vcmask 1044484   ;;  %v626_v45 = vrot.slane %v579_v18, 3 }
 0x265   :  { %v623_v30 = vsel %vm1307_vm13, %v622_v54, %v621_v44  ;;  %v464_v29 = vadd.f32 %v463_v10, %v1152_v14  ;;  %v588_v60 = vsel %vm587_vm14, %v739_v0, %v584_v36  ;;  %vm590_vm9 = vcmp.eq.f32.partialorder %v589_v22, 8.507059e+37 }
 0x266   :  { %v625_v12 = vsel %vm1308_vm1, %v624_v25, %v623_v30  ;;  %v597_v56 = vsub.f32 1.0, %v596_v37  ;;  %v472_v4 = vrot.slane %v471_v50, 1  ;;  %v593_v46 = vsel %vm590_vm9, %v592_v40, %v588_v60 }
 0x267   :  { %v606_v7 = vand.u32 2147483648, %v1167_v5  ;;  %vm1309_vm10 = vcmask 1045509   ;;  %v594_v26 = vmul.f32 %v593_v46, %v464_v29  ;;  %vm601_vm15 = vweird.f32 %v741_v13 }
 0x268   :  { %v627_v2 = vsel %vm1309_vm10, %v626_v45, %v625_v12  ;;  %v598_v6 = vmul.f32 %v741_v13, %v597_v56  ;;  %v604_v43 = vand.u32 2147483647, %v1167_v5  ;;  %vm600_vm8 = vweird.f32 %v1167_v5 }
 0x269   :  { %v628_v33 = vrot.slane %v594_v26, 2  ;;  %vm602_vm4 = vmor %vm600_vm8, %vm601_vm15  ;;  %v607_v14 = vor.u32 1.1754944e-38, %v606_v7  ;;  %v473_v39 = vadd.f32 %v472_v4, %v471_v50  ;;  %vm1310_vm3 = vcmask 1046534  }
 0x26a   :  { %v599_v23 = vadd.f32 %v741_v13, %v598_v6  ;;  %vm605_vm0 = vcmp.eq.f32.partialorder %v604_v43, 8.507059e+37  ;;  %vm1311_vm5 = vcmask 1047559   ;;  %vm1312_vm2 = vcmask 261120  }
 0x26b   :  { %v629_v48 = vsel %vm1310_vm3, %v628_v33, %v627_v2 }
 0x26c   :  { %v603_v47 = vsel %vm602_vm4, %v741_v13, %v599_v23 }
 0x26d   :  { %v608_v9 = vsel %vm605_vm0, %v607_v14, %v603_v47 }
 0x26e   :  { %v609_v49 = vmul.f32 %v608_v9, %v473_v39 }
 0x270   :  { %v630_v15 = vrot.slane %v609_v49, 1 }
 0x272   :  { %v631_v5 = vsel %vm1311_vm5, %v630_v15, %v629_v48 }
 0x273   :  { %633 = vst.msk [vmem:[#allocation7] sm:$0xff] %vm1312_vm2, %v631_v5 }
 0x274   :  { %644 = dma.vmem_to_hbm [thread:$0]  %s640_s1, 128, %s642_s23, [#allocation4]  }
 0x275   :  { %818 = dma.done.wait [#allocation4], 128  }
 0x276   :  { %819 = vsyncadd [#allocation4], 4294967168 }
 0x277   :  { %649 = vsyncpa [#allocation3], 1 }
 0x278   :  { %650 = vsyncpa [#allocation6], 1 }
 0x279   :  { %651 = vsyncpa [#allocation4], 1 }

</bundles_post_ra>
